<compile_context>
chip_gen: v7x
topology: tpu7x:2x2x1
jax: 0.10.0
libtpu: 0.0.40
codegen_flags: <defaults>
</compile_context>

<pallas_src>
import functools
import math

import jax
import jax.numpy as jnp
from jax.experimental import pallas as pl
from jax.experimental.pallas import tpu as pltpu


def _relu(x):
    return jnp.maximum(x, 0.0)


def _time_embed_kernel(t_ref, cp_ref, w1_ref, b1_ref, w2_ref, b2_ref, o_ref, *,
                       activation):
    t = t_ref[...]                              # (TB, 1)
    coeff2 = cp_ref[0:1, :]                     # (1, k_pad) = [coeff, coeff, 0...]
    phase2 = cp_ref[1:2, :]                     # (1, k_pad) = [phase, phase+pi/2, 0...]

    # Fused sinusoidal embedding: [sin(c*t+p), cos(c*t+p)] == sin(coeff2*t + phase2).
    # Padded lanes give sin(0) = 0 and hit zero rows of w1, so they are inert.
    embed = jnp.sin(coeff2 * t + phase2)        # (TB, k_pad)

    # Hidden layer: one lane-dense K=k_pad matmul on the MXU.
    h = jnp.dot(embed, w1_ref[...],
                preferred_element_type=jnp.float32) + b1_ref[...]   # (TB, c_pad)
    h = activation(h)

    # Output layer (lane-dense d_pad-wide block -> unmasked vst).
    out = jnp.dot(h, w2_ref[...],
                  preferred_element_type=jnp.float32) + b2_ref[...]  # (TB, d_pad)
    o_ref[...] = out.astype(o_ref.dtype)


def time_embed_forward(t, coeff, phase, w1, b1, w2, b2, *,
                       activation=_relu, block_b=512):
    """TimeEmbed forward: t (scalar / (B,) / (B,1)) -> (B, dim_out) float32."""
    t = jnp.asarray(t, jnp.float32).reshape(-1, 1)          # t.view(-1, 1).float()
    B = t.shape[0]
    C = coeff.shape[-1]
    D = w2.shape[1]
    assert w1.shape == (2 * C, C)

    # ---- wrapper-side prep: pad every matmul dim to lane/sublane-aligned sizes -------
    k_pad = pl.cdiv(2 * C, 128) * 128      # embedding / matmul-1 K dim
    c_pad = pl.cdiv(C, 128) * 128          # hidden width / matmul-2 K dim
    d_pad = pl.cdiv(D, 128) * 128          # output width (lane-dense store)

    coeff = coeff.reshape(1, C).astype(jnp.float32)
    phase = phase.reshape(1, C).astype(jnp.float32)

    # Pack coeff/phase for sin(coeff2*t + phase2) into one (2, k_pad) array (1 DMA).
    cp = jnp.zeros((2, k_pad), jnp.float32)
    cp = cp.at[0, :C].set(coeff[0]).at[0, C:2 * C].set(coeff[0])
    cp = cp.at[1, :C].set(phase[0]).at[1, C:2 * C].set(phase[0] + math.pi / 2.0)

    w1p = jnp.zeros((k_pad, c_pad), jnp.float32).at[:2 * C, :C].set(w1)
    b1p = jnp.zeros((1, c_pad), jnp.float32).at[:, :C].set(b1.reshape(1, C))
    w2p = jnp.zeros((c_pad, d_pad), jnp.float32).at[:C, :D].set(w2)
    b2p = jnp.zeros((1, d_pad), jnp.float32).at[:, :D].set(b2.reshape(1, D))

    # Batch tile: split into ceil(B/block_b) blocks, round the tile up to a sublane
    # multiple (8) -- minimizes pad waste for small / odd batch sizes.
    n_blocks = pl.cdiv(B, block_b)
    tb = pl.cdiv(pl.cdiv(B, n_blocks), 8) * 8
    b_pad = n_blocks * tb
    t_p = t if b_pad == B else jnp.pad(t, ((0, b_pad - B), (0, 0)))

    resident = lambda shape: pl.BlockSpec(shape, lambda i: (0, 0))  # stays in VMEM
    kernel = functools.partial(_time_embed_kernel, activation=activation)

    out_padded = pl.pallas_call(
        kernel,
        out_shape=jax.ShapeDtypeStruct((b_pad, d_pad), jnp.float32),
        grid=(n_blocks,),
        in_specs=[
            pl.BlockSpec((tb, 1), lambda i: (i, 0)),   # t (pipelined over B)
            resident((2, k_pad)),                      # coeff/phase pack
            resident((k_pad, c_pad)),                  # w1 (padded)
            resident((1, c_pad)),                      # b1 (padded)
            resident((c_pad, d_pad)),                  # w2 (padded)
            resident((1, d_pad)),                      # b2 (padded)
        ],
        out_specs=pl.BlockSpec((tb, d_pad), lambda i: (i, 0)),
        compiler_params=pltpu.CompilerParams(
            dimension_semantics=("parallel",)),        # shard B across cores (v7x)
    )(t_p, cp, w1p, b1p, w2p, b2p)

    return out_padded[:B, :D]


def _reference(t, coeff, phase, w1, b1, w2, b2):
    t = jnp.asarray(t, jnp.float32).reshape(-1, 1)
    arg = coeff * t + phase
    embed = jnp.concatenate([jnp.sin(arg), jnp.cos(arg)], axis=1)
    h = jnp.maximum(embed @ w1 + b1, 0.0)
    return h @ w2 + b2


if __name__ == "__main__":
    # Small deterministic shapes consistent with the module defaults:
    # batch=8, channels=64, dim_out=4, num_layers=2.
    B, C, D = 8, 64, 4

    key = jax.random.PRNGKey(0)
    k_t, k_phase, k_w1, k_b1, k_w2, k_b2 = jax.random.split(key, 6)

    t = jax.random.uniform(k_t, (B, 1), dtype=jnp.float32)
    coeff = jnp.linspace(0.1, 100.0, C, dtype=jnp.float32).reshape(1, C)
    phase = jax.random.normal(k_phase, (1, C), dtype=jnp.float32)     # torch.randn(1, C)

    # hidden Linear(2C -> C) stored as W.T (2C, C); out Linear(C -> D) stored as W.T (C, D)
    w1 = jax.random.normal(k_w1, (2 * C, C), dtype=jnp.float32) * (1.0 / jnp.sqrt(2.0 * C))
    b1 = jax.random.normal(k_b1, (1, C), dtype=jnp.float32) * 0.01
    w2 = jax.random.normal(k_w2, (C, D), dtype=jnp.float32) * (1.0 / jnp.sqrt(1.0 * C))
    b2 = jax.random.normal(k_b2, (1, D), dtype=jnp.float32) * 0.01

    out = jax.block_until_ready(time_embed_forward(t, coeff, phase, w1, b1, w2, b2))
    ref = _reference(t, coeff, phase, w1, b1, w2, b2)
    assert out.shape == (B, D)
    assert jnp.allclose(out, ref, atol=1e-4, rtol=1e-4), "mismatch vs reference (small B)"

    # Gridded / padded-batch path (B not a multiple of any tile), t passed as 1-D.
    B2 = 300
    t2 = jax.random.uniform(jax.random.PRNGKey(1), (B2,), dtype=jnp.float32)
    out2 = jax.block_until_ready(time_embed_forward(t2, coeff, phase, w1, b1, w2, b2))
    ref2 = _reference(t2, coeff, phase, w1, b1, w2, b2)
    assert out2.shape == (B2, D)
    assert jnp.allclose(out2, ref2, atol=1e-4, rtol=1e-4), "mismatch vs reference (grid B)"

    print("KERNEL_OK")
</pallas_src>

<mosaic_0001>
module attributes {stable_mosaic.version = 11 : i64} {
  func.func @_time_embed_kernel(%arg0: i32, %arg1: memref<8x1xf32, #tpu.memory_space<vmem>>, %arg2: memref<2x128xf32, #tpu.memory_space<vmem>>, %arg3: memref<128x128xf32, #tpu.memory_space<vmem>>, %arg4: memref<1x128xf32, #tpu.memory_space<vmem>>, %arg5: memref<128x128xf32, #tpu.memory_space<vmem>>, %arg6: memref<1x128xf32, #tpu.memory_space<vmem>>, %arg7: memref<8x128xf32, #tpu.memory_space<vmem>>) attributes {dimension_semantics = [#tpu.dimension_semantics<parallel>], iteration_bounds = array<i64: 1>, scalar_prefetch = 0 : i64, scratch_operands = 0 : i64, tpu.core_type = #tpu.core_type<tc>, window_params = [{transform_indices = @transform_0, window_bounds = array<i64: 8, 1>}, {pipeline_mode = #tpu.pipeline_mode<synchronous>, transform_indices = @transform_1, window_bounds = array<i64: 2, 128>}, {pipeline_mode = #tpu.pipeline_mode<synchronous>, transform_indices = @transform_2, window_bounds = array<i64: 128, 128>}, {pipeline_mode = #tpu.pipeline_mode<synchronous>, transform_indices = @transform_3, window_bounds = array<i64: 1, 128>}, {pipeline_mode = #tpu.pipeline_mode<synchronous>, transform_indices = @transform_4, window_bounds = array<i64: 128, 128>}, {pipeline_mode = #tpu.pipeline_mode<synchronous>, transform_indices = @transform_5, window_bounds = array<i64: 1, 128>}, {transform_indices = @transform_6, window_bounds = array<i64: 8, 128>}]} {
    %c0 = arith.constant 0 : index
    %c0_0 = arith.constant 0 : index
    %0 = vector.load %arg1[%c0, %c0_0] : memref<8x1xf32, #tpu.memory_space<vmem>>, vector<8x1xf32>
    %c0_1 = arith.constant 0 : index
    %c0_2 = arith.constant 0 : index
    %1 = vector.load %arg2[%c0_1, %c0_2] : memref<2x128xf32, #tpu.memory_space<vmem>>, vector<1x128xf32>
    %c1 = arith.constant 1 : index
    %c0_3 = arith.constant 0 : index
    %2 = vector.load %arg2[%c1, %c0_3] : memref<2x128xf32, #tpu.memory_space<vmem>>, vector<1x128xf32>
    %3 = vector.broadcast %1 : vector<1x128xf32> to vector<8x128xf32>
    %4 = vector.broadcast %0 : vector<8x1xf32> to vector<8x128xf32>
    %5 = arith.mulf %3, %4 : vector<8x128xf32>
    %6 = vector.broadcast %2 : vector<1x128xf32> to vector<8x128xf32>
    %7 = arith.addf %5, %6 : vector<8x128xf32>
    %8 = math.sin %7 : vector<8x128xf32>
    %c0_4 = arith.constant 0 : index
    %c0_5 = arith.constant 0 : index
    %9 = vector.load %arg3[%c0_4, %c0_5] : memref<128x128xf32, #tpu.memory_space<vmem>>, vector<128x128xf32>
    %cst = arith.constant dense<0.000000e+00> : vector<8x128xf32>
    %10 = tpu.matmul %8, %9, %cst {dimension_numbers = #tpu.dot_dimension_numbers<[1], [0], [0], [1], [0, 0, 1, 1], [], []>} : vector<8x128xf32>, vector<128x128xf32>, vector<8x128xf32> -> vector<8x128xf32>
    %c0_6 = arith.constant 0 : index
    %c0_7 = arith.constant 0 : index
    %11 = vector.load %arg4[%c0_6, %c0_7] : memref<1x128xf32, #tpu.memory_space<vmem>>, vector<1x128xf32>
    %12 = vector.broadcast %11 : vector<1x128xf32> to vector<8x128xf32>
    %13 = arith.addf %10, %12 : vector<8x128xf32>
    %cst_8 = arith.constant 0.000000e+00 : f32
    %14 = vector.broadcast %cst_8 : f32 to vector<8x128xf32>
    %15 = arith.maximumf %13, %14 : vector<8x128xf32>
    %c0_9 = arith.constant 0 : index
    %c0_10 = arith.constant 0 : index
    %16 = vector.load %arg5[%c0_9, %c0_10] : memref<128x128xf32, #tpu.memory_space<vmem>>, vector<128x128xf32>
    %cst_11 = arith.constant dense<0.000000e+00> : vector<8x128xf32>
    %17 = tpu.matmul %15, %16, %cst_11 {dimension_numbers = #tpu.dot_dimension_numbers<[1], [0], [0], [1], [0, 0, 1, 1], [], []>} : vector<8x128xf32>, vector<128x128xf32>, vector<8x128xf32> -> vector<8x128xf32>
    %c0_12 = arith.constant 0 : index
    %c0_13 = arith.constant 0 : index
    %18 = vector.load %arg6[%c0_12, %c0_13] : memref<1x128xf32, #tpu.memory_space<vmem>>, vector<1x128xf32>
    %19 = vector.broadcast %18 : vector<1x128xf32> to vector<8x128xf32>
    %20 = arith.addf %17, %19 : vector<8x128xf32>
    %c0_14 = arith.constant 0 : index
    %c0_15 = arith.constant 0 : index
    %21 = vector.load %arg7[%c0_14, %c0_15] : memref<8x128xf32, #tpu.memory_space<vmem>>, vector<8x128xf32>
    tpu.vector_store %arg7[%c0_14, %c0_15], %20 {strides = array<i32>} : memref<8x128xf32, #tpu.memory_space<vmem>>, vector<8x128xf32>,
    return
  }
  func.func @transform_0(%arg0: i32) -> (i32, i32) {
    %c0_i32 = arith.constant 0 : i32
    %c0_i32_0 = arith.constant 0 : i32
    return %arg0, %c0_i32 : i32, i32
  }
  func.func @transform_1(%arg0: i32) -> (i32, i32) {
    %c0_i32 = arith.constant 0 : i32
    %c0_i32_0 = arith.constant 0 : i32
    %c0_i32_1 = arith.constant 0 : i32
    return %c0_i32, %c0_i32_0 : i32, i32
  }
  func.func @transform_2(%arg0: i32) -> (i32, i32) {
    %c0_i32 = arith.constant 0 : i32
    %c0_i32_0 = arith.constant 0 : i32
    %c0_i32_1 = arith.constant 0 : i32
    return %c0_i32, %c0_i32_0 : i32, i32
  }
  func.func @transform_3(%arg0: i32) -> (i32, i32) {
    %c0_i32 = arith.constant 0 : i32
    %c0_i32_0 = arith.constant 0 : i32
    %c0_i32_1 = arith.constant 0 : i32
    return %c0_i32, %c0_i32_0 : i32, i32
  }
  func.func @transform_4(%arg0: i32) -> (i32, i32) {
    %c0_i32 = arith.constant 0 : i32
    %c0_i32_0 = arith.constant 0 : i32
    %c0_i32_1 = arith.constant 0 : i32
    return %c0_i32, %c0_i32_0 : i32, i32
  }
  func.func @transform_5(%arg0: i32) -> (i32, i32) {
    %c0_i32 = arith.constant 0 : i32
    %c0_i32_0 = arith.constant 0 : i32
    %c0_i32_1 = arith.constant 0 : i32
    return %c0_i32, %c0_i32_0 : i32, i32
  }
  func.func @transform_6(%arg0: i32) -> (i32, i32) {
    %c0_i32 = arith.constant 0 : i32
    %c0_i32_0 = arith.constant 0 : i32
    return %arg0, %c0_i32 : i32, i32
  }
}

</mosaic_0001>

<bundles_post_ra>
// kernel: tpu_custom_call.1
= control target key start
LH: loop header
LB: loop body
LE: loop exit
PB: predicated region body
PF: predicated region fallthrough
CT: control target
= control target key end

     0   :  { %11 = vsyncpa [#allocation3], 0  ;;  %s772_s0 = inlined_call_operand.vmem [shape: f32[8,1], index: 0, kind: input, shape index: {}]   ;;  %s773_s1 = inlined_call_operand.vmem [shape: f32[2,128], index: 1, kind: input, shape index: {}]   ;;  %s774_s2 = inlined_call_operand.hbm [shape: f32[128,128], index: 2, kind: input, shape index: {}]   ;;  %s775_s3 = inlined_call_operand.vmem [shape: f32[1,128], index: 3, kind: input, shape index: {}]   ;;  %s776_s4 = inlined_call_operand.hbm [shape: f32[128,128], index: 4, kind: input, shape index: {}]   ;;  %s777_s5 = inlined_call_operand.vmem [shape: f32[1,128], index: 5, kind: input, shape index: {}]   ;;  %s778_s6 = inlined_call_operand.hbm [shape: f32[8,128], index: 6, kind: output, shape index: {}]  }
   0x1   :  { %12 = vsyncpa [#allocation6], 0 }
   0x2   :  { %13 = vsyncpa [#allocation4], 0  ;;  %s634_s21 = smov [#allocation2]   ;;  %s562_s25 = scalar_lea.hbm %s774_s2, 2048 }
   0x3   :  { %s23_s22 = sshll.u32 %s634_s21, 4  ;;  %p563_p0 = scmp.ne.s32.totalorder %s774_s2, %s562_s25  ;;  %s24_s22 = int_to_ptr.vmem [resolvable:$true] %s23_s22 }
   0x4   :  { %p566_p1 = scmp.lt.u32.totalorder %s562_s25, %s774_s2 }
   0x6   :  { %p568_p2 = pnand %p566_p1, %p563_p0 }
   0x8   :  { %571 = shalt.err (!%p568_p2)
}
   0x9   :  { %s572_s30 = scalar_lea.vmem %s24_s22, 2048  ;;  %p577_p4 = scmp.lt.s32.totalorder %s24_s22, %s24_s22 }
   0xa   :  { %p573_p3 = scmp.ne.s32.totalorder %s24_s22, %s572_s30  ;;  %p578_p5 = scmp.lt.s32.totalorder %s572_s30, %s572_s30 }
   0xc   :  { %p579_p6 = por %p578_p5, %p577_p4 }
   0xe   :  { %p580_p7 = pnand %p579_p6, %p573_p3 }
  0x10   :  { %583 = shalt.err (!%p580_p7)
}
  0x11   :  { %s635_s7 = smov 128   ;;  %s636_s8 = smov 8  }
  0x12   :  { %29 = dma.hbm_to_vmem [thread:$0]  %s774_s2, 2048, %s24_s22, [#allocation3], %s635_s7, %s635_s7, %s636_s8  }
  0x13   :  { %s637_s11 = smov [#allocation5]   ;;  %s584_s15 = scalar_lea.hbm %s776_s4, 2048 }
  0x14   :  { %s37_s12 = sshll.u32 %s637_s11, 4  ;;  %p585_p8 = scmp.ne.s32.totalorder %s776_s4, %s584_s15  ;;  %s38_s12 = int_to_ptr.vmem [resolvable:$true] %s37_s12 }
  0x15   :  { %p588_p9 = scmp.lt.u32.totalorder %s584_s15, %s776_s4 }
  0x17   :  { %p590_p10 = pnand %p588_p9, %p585_p8 }
  0x19   :  { %593 = shalt.err (!%p590_p10)
}
  0x1a   :  { %s594_s20 = scalar_lea.vmem %s38_s12, 2048  ;;  %p599_p12 = scmp.lt.s32.totalorder %s38_s12, %s38_s12 }
  0x1b   :  { %p595_p11 = scmp.ne.s32.totalorder %s38_s12, %s594_s20  ;;  %p600_p13 = scmp.lt.s32.totalorder %s594_s20, %s594_s20 }
  0x1d   :  { %p601_p0 = por %p600_p13, %p599_p12 }
  0x1f   :  { %p602_p1 = pnand %p601_p0, %p595_p11 }
  0x21   :  { %605 = shalt.err (!%p602_p1)
}
  0x22   :  { %43 = dma.hbm_to_vmem [thread:$0]  %s776_s4, 2048, %s38_s12, [#allocation6], %s635_s7, %s635_s7, %s636_s8  }
  0x23   :  { %628 = dma.done.wait [#allocation3], 2048  }
  0x24   :  { %629 = vsyncadd [#allocation3], 4294965248 }
  0x25   :  { %630 = dma.done.wait [#allocation6], 2048  }
  0x26   :  { %631 = vsyncadd [#allocation6], 4294965248  ;;  %v638_v0 = vmov 0   ;;  %v52_v1 = vld [vmem:[%s772_s0] sm:$0xff]  ;;  %v175_v3 = vld [vmem:[#allocation2 + $0x8] sm:$0xff]  ;;  %v639_v5 = vmov 0.0|0.0  }
  0x27   :  { %557 = vset.pattern.permute.xlu0 %v638_v0  ;;  %v174_v2 = vld [vmem:[#allocation2] sm:$0xff]  ;;  %v176_v4 = vld [vmem:[#allocation2 + $0x10] sm:$0xff]  ;;  %490 = vmatprep.subr.bf16.mxu0 %v639_v5  ;;  %v177_v7 = vld [vmem:[#allocation2 + $0x18] sm:$0xff]  ;;  %vm640_vm0 = vmmov 0   ;;  %v641_v8 = vmov 0.0   ;;  %s648_s29 = smov [#allocation7]  }
  0x28   :  { %61 = vperm.xlu0 %557, %v52_v1   ;;  %v491_v6 = vpack.c.bf16 %v175_v3, %v174_v2  ;;  %452 = vmatprep.mubr.msk.f32.mxu0 %vm640_vm0, %v641_v8  ;;  %v494_v9 = vpack.c.bf16 %v177_v7, %v176_v4  ;;  %v178_v10 = vld [vmem:[#allocation2 + $0x20] sm:$0xff]  ;;  %v179_v11 = vld [vmem:[#allocation2 + $0x28] sm:$0xff]  ;;  %v180_v13 = vld [vmem:[#allocation2 + $0x30] sm:$0xff]  ;;  %v642_v1 = vmov 2102212464   ;;  %s368_s30 = sshll.u32 %s648_s29, 4  ;;  %s369_s30 = int_to_ptr.vmem [resolvable:$true] %s368_s30 }
  0x29   :  { %514 = vmatprep.subr.bf16.mxu1 %v639_v5  ;;  %487 = vmatprep.mubr.msk.f32.mxu1 %vm640_vm0, %v641_v8  ;;  %v497_v12 = vpack.c.bf16 %v179_v11, %v178_v10  ;;  %v181_v14 = vld [vmem:[#allocation2 + $0x38] sm:$0xff]  ;;  %v182_v16 = vld [vmem:[#allocation2 + $0x40] sm:$0xff]  ;;  %v183_v17 = vld [vmem:[#allocation2 + $0x48] sm:$0xff]  ;;  %v643_v3 = vmov 920167782   ;;  %s606_s7 = scalar_lea.vmem %s369_s30, 128  ;;  %p611_p3 = scmp.lt.s32.totalorder %s369_s30, %s369_s30 }
  0x2a   :  { %492 = vmatpush3.bf16.msra.mxu0 %v491_v6  ;;  %v500_v15 = vpack.c.bf16 %v181_v14, %v180_v13  ;;  %v503_v18 = vpack.c.bf16 %v183_v17, %v182_v16  ;;  %v184_v19 = vld [vmem:[#allocation2 + $0x50] sm:$0xff]  ;;  %v185_v20 = vld [vmem:[#allocation2 + $0x58] sm:$0xff]  ;;  %v186_v22 = vld [vmem:[#allocation2 + $0x60] sm:$0xff]  ;;  %v644_v7 = vmov 1326507024   ;;  %p607_p2 = scmp.ne.s32.totalorder %s369_s30, %s606_s7  ;;  %p612_p4 = scmp.lt.s32.totalorder %s606_s7, %s606_s7 }
  0x2b   :  { %493 = vmatprep.subr.bf16.mxu0 %v639_v5  ;;  %v506_v21 = vpack.c.bf16 %v185_v20, %v184_v19  ;;  %v187_v23 = vld [vmem:[#allocation2 + $0x68] sm:$0xff]  ;;  %v188_v25 = vld [vmem:[#allocation2 + $0x70] sm:$0xff]  ;;  %v189_v26 = vld [vmem:[#allocation2 + $0x78] sm:$0xff]  ;;  %v646_v11 = vmov 2475754826  }
  0x2c   :  { %v509_v24 = vpack.c.bf16 %v187_v23, %v186_v22  ;;  %v512_v27 = vpack.c.bf16 %v189_v26, %v188_v25  ;;  %v268_v28 = vld [vmem:[#allocation5] sm:$0xff]  ;;  %v269_v29 = vld [vmem:[#allocation5 + $0x8] sm:$0xff]  ;;  %v270_v30 = vld [vmem:[#allocation5 + $0x10] sm:$0xff]  ;;  %v647_v14 = vmov 2131351028   ;;  %p613_p5 = por %p612_p4, %p611_p3 }
  0x2d   :  { %v515_v31 = vpack.c.bf16 %v269_v29, %v268_v28  ;;  %v271_v32 = vld [vmem:[#allocation5 + $0x18] sm:$0xff]  ;;  %v272_v34 = vld [vmem:[#allocation5 + $0x20] sm:$0xff]  ;;  %v273_v35 = vld [vmem:[#allocation5 + $0x28] sm:$0xff] }
  0x2e   :  { %495 = vmatpush3.bf16.msra.mxu0 %v494_v9  ;;  %v518_v33 = vpack.c.bf16 %v271_v32, %v270_v30  ;;  %v521_v36 = vpack.c.bf16 %v273_v35, %v272_v34  ;;  %v274_v37 = vld [vmem:[#allocation5 + $0x30] sm:$0xff]  ;;  %v275_v38 = vld [vmem:[#allocation5 + $0x38] sm:$0xff]  ;;  %v276_v40 = vld [vmem:[#allocation5 + $0x40] sm:$0xff]  ;;  %v645_v9 = vmov 683565275   ;;  %p614_p6 = pnand %p613_p5, %p607_p2 }
  0x2f   :  { %496 = vmatprep.subr.bf16.mxu0 %v639_v5  ;;  %516 = vmatpush3.bf16.msra.mxu1 %v515_v31  ;;  %v524_v39 = vpack.c.bf16 %v275_v38, %v274_v37  ;;  %v277_v41 = vld [vmem:[#allocation5 + $0x48] sm:$0xff]  ;;  %v278_v43 = vld [vmem:[#allocation5 + $0x50] sm:$0xff]  ;;  %v279_v44 = vld [vmem:[#allocation5 + $0x58] sm:$0xff] }
  0x30   :  { %517 = vmatprep.subr.bf16.mxu1 %v639_v5  ;;  %v527_v42 = vpack.c.bf16 %v277_v41, %v276_v40  ;;  %v530_v45 = vpack.c.bf16 %v279_v44, %v278_v43  ;;  %v280_v46 = vld [vmem:[#allocation5 + $0x60] sm:$0xff]  ;;  %v281_v47 = vld [vmem:[#allocation5 + $0x68] sm:$0xff] }
  0x31   :  { %v533_v48 = vpack.c.bf16 %v281_v47, %v280_v46  ;;  %v378_v49 = vld [vmem:[%s773_s1] ss:$0 sm:$0xff]  ;;  %v379_v50 = vld [vmem:[%s773_s1 + $0x1] ss:$0 sm:$0xff] }
  0x32   :  { %498 = vmatpush3.bf16.msra.mxu0 %v497_v12 }
  0x33   :  { %499 = vmatprep.subr.bf16.mxu0 %v639_v5  ;;  %519 = vmatpush3.bf16.msra.mxu1 %v518_v33 }
  0x34   :  { %520 = vmatprep.subr.bf16.mxu1 %v639_v5 }
  0x36   :  { %501 = vmatpush3.bf16.msra.mxu0 %v500_v15 }
  0x37   :  { %502 = vmatprep.subr.bf16.mxu0 %v639_v5  ;;  %522 = vmatpush3.bf16.msra.mxu1 %v521_v36 }
  0x38   :  { %523 = vmatprep.subr.bf16.mxu1 %v639_v5 }
  0x3a   :  { %504 = vmatpush3.bf16.msra.mxu0 %v503_v18 }
  0x3b   :  { %505 = vmatprep.subr.bf16.mxu0 %v639_v5  ;;  %525 = vmatpush3.bf16.msra.mxu1 %v524_v39 }
  0x3c   :  { %526 = vmatprep.subr.bf16.mxu1 %v639_v5 }
  0x3e   :  { %507 = vmatpush3.bf16.msra.mxu0 %v506_v21 }
  0x3f   :  { %508 = vmatprep.subr.bf16.mxu0 %v639_v5  ;;  %528 = vmatpush3.bf16.msra.mxu1 %v527_v42 }
  0x40   :  { %529 = vmatprep.subr.bf16.mxu1 %v639_v5 }
  0x42   :  { %510 = vmatpush3.bf16.msra.mxu0 %v509_v24 }
  0x43   :  { %511 = vmatprep.subr.bf16.mxu0 %v639_v5  ;;  %531 = vmatpush3.bf16.msra.mxu1 %v530_v45 }
  0x44   :  { %532 = vmatprep.subr.bf16.mxu1 %v639_v5 }
  0x46   :  { %513 = vmatpush3.bf16.msra.mxu0 %v512_v27 }
  0x47   :  { %534 = vmatpush3.bf16.msra.mxu1 %v533_v48 }
  0x48   :  { %535 = vmatprep.subr.bf16.mxu1 %v639_v5 }
  0xa7   :  { %v62_v51 = vpop.permute.xlu0 %61 }
  0xa8   :  { %v64_v52 = vmul.f32 %v378_v49, %v62_v51 }
  0xaa   :  { %v733_v53 = vadd.f32 %v379_v50, %v64_v52 }
  0xac   :  { %v73_v54 = vand.u32 2139095040, %v733_v53  ;;  %v70_v55 = vand.u32 2147483647, %v733_v53  ;;  %vm72_vm8 = vcmp.lt.s32.totalorder %v733_v53, 0  ;;  %vm162_vm13 = vweird.f32 %v733_v53 }
  0xae   :  { %v74_v56 = vshrl.u32 %v73_v54, 23  ;;  %v77_v58 = vand.u32 8388607, %v70_v55  ;;  %vm71_vm9 = vcmp.le.f32.partialorder %v70_v55, 0.7853982 }
  0xb0   :  { %v380_v57 = vadd.s32 4294967169, %v74_v56  ;;  %v78_v61 = vor.u32 8388608, %v77_v58 }
  0xb2   :  { %v80_v59 = vadd.s32 1, %v380_v57  ;;  %v118_v5 = vshll.u32 %v78_v61, 8 }
  0xb4   :  { %vm81_vm1 = vcmp.gt.s32.totalorder %v80_v59, 0 }
  0xb5   :  { %v82_v60 = vsel %vm81_vm1, %v80_v59, 0 }
  0xb6   :  { %v84_v62 = vand.u32 31, %v82_v60  ;;  %v83_v63 = vshrl.u32 %v82_v60, 5 }
  0xb8   :  { %v85_v0 = vsub.s32 32, %v84_v62  ;;  %v96_v2 = vshll.u32 %v642_v1, %v84_v62  ;;  %v99_v4 = vshll.u32 %v643_v3, %v84_v62  ;;  %v87_v10 = vshll.u32 %v645_v9, %v84_v62 }
  0xb9   :  { %v90_v13 = vshll.u32 %v646_v11, %v84_v62  ;;  %v93_v16 = vshll.u32 %v647_v14, %v84_v62  ;;  %vm105_vm2 = vcmp.lt.s32.totalorder %v83_v63, 4  ;;  %vm102_vm3 = vcmp.lt.s32.totalorder %v83_v63, 1 }
  0xba   :  { %v97_v6 = vshrl.u32 %v643_v3, %v85_v0  ;;  %v100_v8 = vshrl.u32 %v644_v7, %v85_v0  ;;  %v88_v12 = vshrl.u32 %v646_v11, %v85_v0  ;;  %v91_v15 = vshrl.u32 %v647_v14, %v85_v0 }
  0xbb   :  { %v94_v17 = vshrl.u32 %v642_v1, %v85_v0  ;;  %v86_v21 = vshrl.u32 %v645_v9, %v85_v0  ;;  %vm103_vm4 = vcmp.lt.s32.totalorder %v83_v63, 2  ;;  %vm104_vm5 = vcmp.lt.s32.totalorder %v83_v63, 3 }
  0xbc   :  { %v98_v18 = vor.u32 %v97_v6, %v96_v2  ;;  %v101_v19 = vor.u32 %v100_v8, %v99_v4  ;;  %v89_v20 = vor.u32 %v88_v12, %v87_v10  ;;  %v92_v22 = vor.u32 %v91_v15, %v90_v13 }
  0xbd   :  { %v95_v23 = vor.u32 %v94_v17, %v93_v16 }
  0xbe   :  { %v111_v24 = vsel %vm105_vm2, %v98_v18, 920167782  ;;  %v115_v25 = vsel %vm105_vm2, %v101_v19, 1326507024  ;;  %v110_v27 = vsel %vm102_vm3, %v89_v20, %v92_v22  ;;  %v106_v30 = vsel %vm102_vm3, %v86_v21, %v89_v20  ;;  %v283_v19 = vld [vmem:[#allocation5 + $0x78] sm:$0xff] }
  0xbf   :  { %v107_v26 = vsel %vm105_vm2, %v95_v23, 2102212464  ;;  %v112_v28 = vsel %vm104_vm5, %v95_v23, %v111_v24  ;;  %v114_v29 = vsel %vm102_vm3, %v92_v22, %v95_v23  ;;  %v116_v33 = vsel %vm104_vm5, %v98_v18, %v115_v25  ;;  %v282_v18 = vld [vmem:[#allocation5 + $0x70] sm:$0xff]  ;;  %v384_v21 = vld [vmem:[%s775_s3] ss:$0 sm:$0xff] }
  0xc0   :  { %v108_v31 = vsel %vm104_vm5, %v92_v22, %v107_v26  ;;  %v113_v32 = vsel %vm103_vm4, %v110_v27, %v112_v28  ;;  %v117_v34 = vsel %vm103_vm4, %v114_v29, %v116_v33  ;;  %v536_v20 = vpack.c.bf16 %v283_v19, %v282_v18 }
  0xc1   :  { %v739_v35 = vmul.u32.u64.low %v118_v5, %v113_v32  ;;  %v740_v36 = vmul.u32.u64.high %v118_v5, %v113_v32, %v739_v35  ;;  %v742_v37 = vmul.u32.u64.low %v118_v5, %v117_v34  ;;  %v743_v38 = vmul.u32.u64.high %v118_v5, %v117_v34, %v742_v37 }
  0xc2   :  { %v109_v39 = vsel %vm103_vm4, %v106_v30, %v108_v31  ;;  %537 = vmatpush3.bf16.msra.mxu1 %v536_v20 }
  0xc3   :  { %v128_v40 = vadd.s32 1, %v740_v36  ;;  %v125_v41 = vmul.u32 %v118_v5, %v109_v39  ;;  %vm127_vm6 = vc.u32 %v743_v38, %v739_v35  ;;  %v126_v54 = vadd.s32 %v739_v35, %v743_v38 }
  0xc5   :  { %v129_v42 = vsel %vm127_vm6, %v128_v40, %v740_v36 }
  0xc6   :  { %v130_v43 = vadd.s32 %v129_v42, %v125_v41 }
  0xc8   :  { %v131_v44 = vadd.s32 536870912, %v130_v43 }
  0xca   :  { %v132_v45 = vshrl.u32 %v131_v44, 30 }
  0xcc   :  { %v133_v46 = vshll.u32 %v132_v45, 30  ;;  %v156_v3 = vsub.s32 4, %v132_v45 }
  0xce   :  { %v134_v47 = vsub.s32 %v130_v43, %v133_v46  ;;  %v157_v6 = vsel %vm72_vm8, %v156_v3, %v132_v45 }
  0xcf   :  { %v159_v8 = vsel %vm71_vm9, 0, %v157_v6 }
  0xd0   :  { %v136_v48 = vsub.s32 0, %v134_v47  ;;  %v163_v9 = vadd.s32 3, %v159_v8 }
  0xd2   :  { %v381_v49 = vmin.u32 %v136_v48, %v134_v47  ;;  %v164_v10 = vand.u32 3, %v163_v9 }
  0xd4   :  { %v138_v50 = vclz %v381_v49  ;;  %vm169_vm10 = vcmp.eq.s32.totalorder %v164_v10, 2  ;;  %vm166_vm11 = vcmp.eq.s32.totalorder %v164_v10, 0  ;;  %vm165_vm12 = vcmp.lt.s32.totalorder %v164_v10, 2 }
  0xd6   :  { %v382_v51 = vadd.s32 4294967294, %v138_v50 }
  0xd8   :  { %vm383_vm7 = vcmp.lt.s32.totalorder %v382_v51, 0 }
  0xd9   :  { %v141_v52 = vsel %vm383_vm7, 0, %v382_v51 }
  0xda   :  { %v142_v56 = vsub.s32 32, %v141_v52  ;;  %v146_v57 = vsub.s32 4294967266, %v141_v52  ;;  %v143_v58 = vshll.u32 %v134_v47, %v141_v52 }
  0xdc   :  { %v144_v59 = vshrl.u32 %v126_v54, %v142_v56  ;;  %v147_v60 = vadd.s32 127, %v146_v57 }
  0xde   :  { %v145_v61 = vor.u32 %v144_v59, %v143_v58  ;;  %v148_v62 = vshll.u32 %v147_v60, 23 }
  0xe0   :  { %v149_v63 = vor.u32 4788187, %v148_v62  ;;  %v152_v1 = vcvt.s32.f32 %v145_v61 }
  0xe2   :  { %v150_v0 = vand.u32 2147483647, %v149_v63 }
  0xe4   :  { %v153_v2 = vmul.f32 %v152_v1, %v150_v0 }
  0xe6   :  { %v154_v4 = vxor.u32 2147483648, %v153_v2 }
  0xe8   :  { %v155_v5 = vsel %vm72_vm8, %v154_v4, %v153_v2 }
  0xe9   :  { %v158_v7 = vsel %vm71_vm9, %v733_v53, %v155_v5  ;;  %v385_v53 = vld [vmem:[%s777_s5] ss:$0 sm:$0xff] }
  0xea   :  { %558 = vcosq.f32 %v158_v7 }
  0xeb   :  { %560 = vsinq.f32 %v158_v7 }
  0xf4   :  { %v559_v11 = vpop.eup %558 }
  0xf5   :  { %v561_v12 = vpop.eup %560  ;;  %v170_v13 = vxor.u32 2147483648, %v559_v11 }
  0xf6   :  { %v167_v14 = vxor.u32 2147483648, %v561_v12 }
  0xf7   :  { %v171_v15 = vsel %vm169_vm10, %v170_v13, %v561_v12 }
  0xf8   :  { %v168_v16 = vsel %vm166_vm11, %v559_v11, %v167_v14 }
  0xf9   :  { %v172_v55 = vsel %vm165_vm12, %v168_v16, %v171_v15 }
  0xfa   :  { %v173_v17 = vsel %vm162_vm13, nan, %v172_v55 }
  0xfb   :  { %453 = vmatmul.mubr.f32.vlgmr.msra.gmra.mrb[0].mxu0 %v173_v17 }
 0x1ce   :  { %v263_v22 = vpop.f32.mrb[0].mxu0 }
 0x1cf   :  { %v264_v23 = vadd.f32 %v384_v21, %v263_v22  ;;  %v454_v24 = vpop.f32.mrb[1].mxu0 }
 0x1d1   :  { %v267_v25 = vmax.f32 %v264_v23, 0.0 }
 0x1d3   :  { %488 = vmatmul.mubr.f32.vlgmr.msra.gmra.mrb[0].mxu1 %v267_v25 }
 0x2a6   :  { %v357_v26 = vpop.f32.mrb[0].mxu1 }
 0x2a7   :  { %v358_v27 = vadd.f32 %v385_v53, %v357_v26  ;;  %v489_v28 = vpop.f32.mrb[1].mxu1 }
 0x2a9   :  { %361 = vst [vmem:[#allocation7] sm:$0xff] %v358_v27 }
 0x2aa   :  { %617 = shalt.err (!%p614_p6)
}
 0x2ab   :  { %s618_s9 = scalar_lea.hbm %s778_s6, 128 }
 0x2ac   :  { %p619_p7 = scmp.ne.s32.totalorder %s778_s6, %s618_s9  ;;  %p622_p8 = scmp.lt.u32.totalorder %s618_s9, %s778_s6 }
 0x2ae   :  { %p624_p9 = pnand %p622_p8, %p619_p7 }
 0x2b0   :  { %627 = shalt.err (!%p624_p9)
}
 0x2b1   :  { %371 = dma.vmem_to_hbm [thread:$0]  %s369_s30, 128, %s778_s6, [#allocation4]  }
 0x2b2   :  { %632 = dma.done.wait [#allocation4], 128  }
 0x2b3   :  { %633 = vsyncadd [#allocation4], 4294967168 }
 0x2b4   :  { %375 = vsyncpa [#allocation3], 1 }
 0x2b5   :  { %376 = vsyncpa [#allocation6], 1 }
 0x2b6   :  { %377 = vsyncpa [#allocation4], 1 }

</bundles_post_ra>
